<compile_context>
chip_gen: v7x
topology: tpu7x:2x2x1
jax: 0.10.0
libtpu: 0.0.40
codegen_flags: <defaults>
</compile_context>

<pallas_src>
import functools

import jax
import jax.numpy as jnp
from jax.experimental import pallas as pl
from jax.experimental.pallas import tpu as pltpu


def _round_up(x, m):
    return (x + m - 1) // m * m


def _enc_dec_kernel(x_ref, we_ref, be_ref, wd_ref, bd_ref, o_ref):
    # x_ref:  (TM, F)  f32 frame tile (cast to bf16 here, not in the wrapper)
    # we_ref: (F, H)   bf16 encoder weight    be_ref: (1, H) f32 bias
    # wd_ref: (H, P)   bf16 decoder weight    bd_ref: (1, P) f32 bias
    # o_ref:  (TM, P)  bf16 (or f32), P == n_pitches (no lane padding in HBM)
    xb = x_ref[...].astype(jnp.bfloat16)
    h = jnp.dot(xb, we_ref[...], preferred_element_type=jnp.float32)
    h = jnp.maximum(h + be_ref[...], 0.0)                 # bias + ReLU in f32
    y = jnp.dot(h.astype(wd_ref.dtype), wd_ref[...],
                preferred_element_type=jnp.float32)
    # Cast is the very last op so all VPU math stays f32 (v5e-friendly).
    o_ref[...] = (y + bd_ref[...]).astype(o_ref.dtype)


def _choose_tm(n, tm_max=4096, min_steps=4):
    # At least `min_steps` grid steps when possible (software pipeline + both
    # v7x TensorCores), rows a multiple of 16 (bf16 sublane packing), capped at
    # tm_max (~3 MB double-buffered VMEM footprint, fits every generation).
    tm = _round_up(max((n + min_steps - 1) // min_steps, 16), 16)
    return min(tm, tm_max, _round_up(n, 16))


def _run_enc_dec(x2d, w_enc, b_enc, w_dec, b_dec, tm, out_dtype):
    n, f = x2d.shape
    h = w_enc.shape[1]
    p = w_dec.shape[1]
    grid = ((n + tm - 1) // tm,)                  # ragged tail handled by Pallas
    flops = 2 * n * (f * h + h * p)
    bytes_accessed = (n * f * x2d.dtype.itemsize                 # x read (f32)
                      + n * p * jnp.dtype(out_dtype).itemsize    # output write
                      + (f * h + h * p) * 2 + (h + p) * 4)       # weights/biases
    return pl.pallas_call(
        _enc_dec_kernel,
        out_shape=jax.ShapeDtypeStruct((n, p), out_dtype),
        grid=grid,
        in_specs=[
            pl.BlockSpec((tm, f), lambda i: (i, 0)),   # frame tile, pipelined
            pl.BlockSpec((f, h), lambda i: (0, 0)),    # weights stay VMEM-resident
            pl.BlockSpec((1, h), lambda i: (0, 0)),
            pl.BlockSpec((h, p), lambda i: (0, 0)),
            pl.BlockSpec((1, p), lambda i: (0, 0)),
        ],
        out_specs=pl.BlockSpec((tm, p), lambda i: (i, 0)),
        compiler_params=pltpu.CompilerParams(
            # Rows are independent: megacore split on v7x, no-op on v5e/v6e.
            dimension_semantics=("parallel",),
        ),
        cost_estimate=pl.CostEstimate(
            flops=flops, transcendentals=0, bytes_accessed=bytes_accessed),
    )(x2d, w_enc, b_enc, w_dec, b_dec)


@functools.partial(jax.jit, static_argnames=("out_dtype",))
def _forward(x, w_enc, b_enc, w_dec, b_dec, *, out_dtype):
    b, t, f = x.shape
    n = b * t
    tm = _choose_tm(n)
    x2d = x.reshape(n, f)          # contiguous metadata reshape: no copy/cast/pad
    y = _run_enc_dec(x2d, w_enc, b_enc, w_dec, b_dec, tm, out_dtype)
    return y.reshape(b, t, -1)     # free reshape; kernel already wrote exactly P cols


class AdaptiveAMTModelPallas:
    """JAX/Pallas port of AdaptiveAMTModel with a concrete Linear encoder/decoder."""

    def __init__(self, n_mels, hidden, n_pitches, num_piano_types, key,
                 out_dtype=jnp.bfloat16):
        self.num_piano_types = num_piano_types
        self.n_pitches = n_pitches
        self.out_dtype = jnp.dtype(out_dtype)
        k1, k2, k3, k4 = jax.random.split(key, 4)
        # Deterministic synthetic parameters (no checkpoint loading).
        w_enc = (jax.random.normal(k1, (n_mels, hidden), jnp.float32)
                 * (1.0 / jnp.sqrt(n_mels)))
        b_enc = jax.random.normal(k2, (1, hidden), jnp.float32) * 0.01
        w_dec = (jax.random.normal(k3, (hidden, n_pitches), jnp.float32)
                 * (1.0 / jnp.sqrt(hidden)))
        b_dec = jax.random.normal(k4, (1, n_pitches), jnp.float32) * 0.01
        # bf16 weights (memory-bound -> halve weight traffic); f32 biases so the
        # bias-add / ReLU stay on the f32 accumulator.
        self.w_enc = w_enc.astype(jnp.bfloat16)
        self.b_enc = b_enc
        self.w_dec = w_dec.astype(jnp.bfloat16)
        self.b_dec = b_dec

    def __call__(self, x, piano_type):
        # x: (B, T, F); piano_type is a static Python int (as in the reference).
        out = _forward(x, self.w_enc, self.b_enc, self.w_dec, self.b_dec,
                       out_dtype=self.out_dtype)
        # All decoders share parameters (ModuleList of the SAME instance), so
        # every output is identical: compute once, index the static piano_type.
        # TODO(synk): if per-piano decoders are ever deep-copied / separately
        # initialized, run the decoder matmul per selected head instead.
        outputs = [out] * self.num_piano_types
        return outputs[piano_type]


def _reference(x, model):
    # Pure-JAX reference at the same (bf16 in / f32 acc) precision as the kernel.
    xb = x.astype(jnp.bfloat16)
    h = jnp.einsum("btf,fh->bth", xb, model.w_enc,
                   preferred_element_type=jnp.float32) + model.b_enc[0]
    h = jnp.maximum(h, 0.0)
    y = jnp.einsum("bth,hp->btp", h.astype(jnp.bfloat16), model.w_dec,
                   preferred_element_type=jnp.float32) + model.b_dec[0]
    return y


if __name__ == "__main__":
    key = jax.random.PRNGKey(0)
    k_x, k_p = jax.random.split(key)

    # Small shapes: batch=2, frames=64, mel bins=32, hidden=64, 88 piano pitches.
    B, T, F, H, P = 2, 64, 32, 64, 88
    num_piano_types = 3
    piano_type = 1  # static selection, as in the reference forward

    x = jax.random.normal(k_x, (B, T, F), jnp.float32)

    model = AdaptiveAMTModelPallas(F, H, P, num_piano_types, k_p)
    out = model(x, piano_type)
    out = jax.block_until_ready(out)

    ref = _reference(x, model)
    assert out.shape == (B, T, P)
    assert out.dtype == model.out_dtype
    assert jnp.allclose(out.astype(jnp.float32), ref, atol=2e-2, rtol=2e-2)

    print("KERNEL_OK")
</pallas_src>

<mosaic_0001>
module attributes {stable_mosaic.version = 11 : i64} {
  func.func @_enc_dec_kernel(%arg0: i32, %arg1: memref<32x32xf32, #tpu.memory_space<vmem>>, %arg2: memref<32x64xbf16, #tpu.memory_space<vmem>>, %arg3: memref<1x64xf32, #tpu.memory_space<vmem>>, %arg4: memref<64x88xbf16, #tpu.memory_space<vmem>>, %arg5: memref<1x88xf32, #tpu.memory_space<vmem>>, %arg6: memref<32x88xbf16, #tpu.memory_space<vmem>>) attributes {dimension_semantics = [#tpu.dimension_semantics<parallel>], iteration_bounds = array<i64: 4>, scalar_prefetch = 0 : i64, scratch_operands = 0 : i64, tpu.core_type = #tpu.core_type<tc>, window_params = [{transform_indices = @transform_0, window_bounds = array<i64: 32, 32>}, {pipeline_mode = #tpu.pipeline_mode<synchronous>, transform_indices = @transform_1, window_bounds = array<i64: 32, 64>}, {pipeline_mode = #tpu.pipeline_mode<synchronous>, transform_indices = @transform_2, window_bounds = array<i64: 1, 64>}, {pipeline_mode = #tpu.pipeline_mode<synchronous>, transform_indices = @transform_3, window_bounds = array<i64: 64, 88>}, {pipeline_mode = #tpu.pipeline_mode<synchronous>, transform_indices = @transform_4, window_bounds = array<i64: 1, 88>}, {transform_indices = @transform_5, window_bounds = array<i64: 32, 88>}]} {
    %c0 = arith.constant 0 : index
    %c0_0 = arith.constant 0 : index
    %0 = vector.load %arg1[%c0, %c0_0] : memref<32x32xf32, #tpu.memory_space<vmem>>, vector<32x32xf32>
    %1 = arith.truncf %0 : vector<32x32xf32> to vector<32x32xbf16>
    %c0_1 = arith.constant 0 : index
    %c0_2 = arith.constant 0 : index
    %2 = vector.load %arg2[%c0_1, %c0_2] : memref<32x64xbf16, #tpu.memory_space<vmem>>, vector<32x64xbf16>
    %cst = arith.constant dense<0.000000e+00> : vector<32x64xf32>
    %3 = tpu.matmul %1, %2, %cst {dimension_numbers = #tpu.dot_dimension_numbers<[1], [0], [0], [1], [0, 0, 1, 1], [], []>} : vector<32x32xbf16>, vector<32x64xbf16>, vector<32x64xf32> -> vector<32x64xf32>
    %c0_3 = arith.constant 0 : index
    %c0_4 = arith.constant 0 : index
    %4 = vector.load %arg3[%c0_3, %c0_4] : memref<1x64xf32, #tpu.memory_space<vmem>>, vector<1x64xf32>
    %5 = vector.broadcast %4 : vector<1x64xf32> to vector<32x64xf32>
    %6 = arith.addf %3, %5 : vector<32x64xf32>
    %cst_5 = arith.constant 0.000000e+00 : f32
    %7 = vector.broadcast %cst_5 : f32 to vector<32x64xf32>
    %8 = arith.maximumf %6, %7 : vector<32x64xf32>
    %9 = arith.truncf %8 : vector<32x64xf32> to vector<32x64xbf16>
    %c0_6 = arith.constant 0 : index
    %c0_7 = arith.constant 0 : index
    %10 = vector.load %arg4[%c0_6, %c0_7] : memref<64x88xbf16, #tpu.memory_space<vmem>>, vector<64x88xbf16>
    %cst_8 = arith.constant dense<0.000000e+00> : vector<32x88xf32>
    %11 = tpu.matmul %9, %10, %cst_8 {dimension_numbers = #tpu.dot_dimension_numbers<[1], [0], [0], [1], [0, 0, 1, 1], [], []>} : vector<32x64xbf16>, vector<64x88xbf16>, vector<32x88xf32> -> vector<32x88xf32>
    %c0_9 = arith.constant 0 : index
    %c0_10 = arith.constant 0 : index
    %12 = vector.load %arg5[%c0_9, %c0_10] : memref<1x88xf32, #tpu.memory_space<vmem>>, vector<1x88xf32>
    %13 = vector.broadcast %12 : vector<1x88xf32> to vector<32x88xf32>
    %14 = arith.addf %11, %13 : vector<32x88xf32>
    %15 = arith.truncf %14 : vector<32x88xf32> to vector<32x88xbf16>
    %c0_11 = arith.constant 0 : index
    %c0_12 = arith.constant 0 : index
    %16 = vector.load %arg6[%c0_11, %c0_12] : memref<32x88xbf16, #tpu.memory_space<vmem>>, vector<32x88xbf16>
    tpu.vector_store %arg6[%c0_11, %c0_12], %15 {strides = array<i32>} : memref<32x88xbf16, #tpu.memory_space<vmem>>, vector<32x88xbf16>,
    return
  }
  func.func @transform_0(%arg0: i32) -> (i32, i32) {
    %c0_i32 = arith.constant 0 : i32
    %c0_i32_0 = arith.constant 0 : i32
    return %arg0, %c0_i32 : i32, i32
  }
  func.func @transform_1(%arg0: i32) -> (i32, i32) {
    %c0_i32 = arith.constant 0 : i32
    %c0_i32_0 = arith.constant 0 : i32
    %c0_i32_1 = arith.constant 0 : i32
    return %c0_i32, %c0_i32_0 : i32, i32
  }
  func.func @transform_2(%arg0: i32) -> (i32, i32) {
    %c0_i32 = arith.constant 0 : i32
    %c0_i32_0 = arith.constant 0 : i32
    %c0_i32_1 = arith.constant 0 : i32
    return %c0_i32, %c0_i32_0 : i32, i32
  }
  func.func @transform_3(%arg0: i32) -> (i32, i32) {
    %c0_i32 = arith.constant 0 : i32
    %c0_i32_0 = arith.constant 0 : i32
    %c0_i32_1 = arith.constant 0 : i32
    return %c0_i32, %c0_i32_0 : i32, i32
  }
  func.func @transform_4(%arg0: i32) -> (i32, i32) {
    %c0_i32 = arith.constant 0 : i32
    %c0_i32_0 = arith.constant 0 : i32
    %c0_i32_1 = arith.constant 0 : i32
    return %c0_i32, %c0_i32_0 : i32, i32
  }
  func.func @transform_5(%arg0: i32) -> (i32, i32) {
    %c0_i32 = arith.constant 0 : i32
    %c0_i32_0 = arith.constant 0 : i32
    return %arg0, %c0_i32 : i32, i32
  }
}

</mosaic_0001>

<bundles_post_ra>
// kernel: _forward.1
= control target key start
LH: loop header
LB: loop body
LE: loop exit
PB: predicated region body
PF: predicated region fallthrough
CT: control target
= control target key end

     0   :  { %10 = vsyncpa [#allocation3], 0  ;;  %s847_s0 = inlined_call_operand.vmem [shape: f32[128,32], index: 0, kind: input, shape index: {}]   ;;  %s848_s1 = inlined_call_operand.vmem [shape: bf16[32,64], index: 1, kind: input, shape index: {}]   ;;  %s849_s2 = inlined_call_operand.vmem [shape: f32[1,64], index: 2, kind: input, shape index: {}]   ;;  %s850_s3 = inlined_call_operand.vmem [shape: bf16[64,88], index: 3, kind: input, shape index: {}]   ;;  %s851_s4 = inlined_call_operand.vmem [shape: f32[1,88], index: 4, kind: input, shape index: {}]   ;;  %s852_s5 = inlined_call_operand.hbm [shape: bf16[128,88], index: 5, kind: output, shape index: {}]  }
   0x1   :  { %12 = vsyncpa [#allocation3 + $0x1], 0  ;;  %s717_s18 = smov 0   ;;  %s719_s19 = smov 0  }
   0x2   :  { %s721_s20 = smov 0   ;;  %s723_s21 = smov 0  }
   0x3 LB: > { %s738_s22 = sadd.s32 4294967295, %s682_s21   ;;  %s510_s23 = sadd.s32 4294967294, %s682_s21   ;;  %s682_s21 = sphi %s723_s21, %s858_s21   ;;  %s678_s20 = sphi %s721_s20, %s857_s20   ;;  %s674_s19 = sphi %s719_s19, %s856_s19   ;;  %s670_s18 = sphi %s717_s18, %s855_s18  }
   0x4   : > { %s742_s24 = sadd.s32 1, %s682_s21   ;;  %s135_s25 = sadd.s32 1, %s678_s20 }
   0x5   : > { %s132_s26 = ssub.s32 %s682_s21, %s742_s24  ;;  %p145_p0 = scmp.ne.s32.totalorder %s678_s20, %s674_s19 }
   0x6   : > { %p133_p1 = scmp.eq.s32.totalorder %s132_s26, 0  ;;  %p146_p2 = scmp.eq.s32.totalorder %s738_s22, 3 }
   0x7   : > { %p151_p3 = scmp.ne.s32.totalorder %s674_s19, %s670_s18  ;;  %p152_p4 = scmp.eq.s32.totalorder %s510_s23, 3 }
   0x8   : > { %s753_s27 = scalar_select %p133_p1, %s678_s20, %s135_s25  }
   0x9   : > { %p755_p5 = por %p146_p2, %p145_p0  ;;  %p759_p6 = por %p152_p4, %p151_p3 }
   0xa   : > { %p513_p7 = scmp.ge.s32.totalorder %s682_s21, 1  ;;  %p191_p8 = scmp.lt.s32.totalorder %s682_s21, 5 }
   0xc   : > { %p192_p9 = pnand %p513_p7, %p191_p8 }
   0xd   : > { %v614_v0 = vld [vmem:[%s848_s1] sm:$0xff] (!%p192_p9)   ;;  %s515_s7 = sshll.u32 (!%p192_p9), %s738_s22, 2  ;;  %v615_v1 = vld [vmem:[%s848_s1 + $0x8] sm:$0xff] (!%p192_p9)   ;;  %vm256_vm0 = vcmask (!%p192_p9), 261120   ;;  %v618_v10 = vld [vmem:[%s850_s3 + $0x10] sm:$0xff] (!%p192_p9)   ;;  %vm357_vm1 = vcmask (!%p192_p9), 523264  }
   0xe   : > { %195 = sbr.rel (%p192_p9) target bundleno = 484 (0x1e4), region = 40  ;;  %p220_p10 = scmp.lt.s32.totalorder (!%p192_p9), %s515_s7, 15  ;;  %553 = vmatprep.subr.bf16.mxu0 (!%p192_p9), %v614_v0  ;;  %v616_v2 = vld [vmem:[%s850_s3] sm:$0xff] (!%p192_p9)   ;;  %v617_v3 = vld [vmem:[%s850_s3 + $0x8] sm:$0xff] (!%p192_p9)   ;;  %v619_v11 = vld [vmem:[%s850_s3 + $0x18] sm:$0xff] (!%p192_p9)   ;;  %vm429_vm2 = vcmask (!%p192_p9), 715776  }
   0xf   : > { %554 = vmatpush3.bf16.msra.mxu0 (!%p192_p9), %v614_v0  ;;  %561 = vmatprep.subr.bf16.mxu1 (!%p192_p9), %v616_v2  ;;  %v517_v12 = vld [vmem:[%s849_s2] ss:$0 sm:$0xff] (!%p192_p9)  ;;  %s216_s8 = sand.u32 (!%p192_p9), 1, %s674_s19   ;;  %s684_s25 = smov (!%p192_p9), [#allocation2]  }
  0x10   : > { %555 = vmatprep.subr.bf16.mxu0 (!%p192_p9), %v615_v1  ;;  %562 = vmatpush3.bf16.msra.mxu1 (!%p192_p9), %v616_v2  ;;  %s514_s9 = sshll.u32 (!%p192_p9), %s216_s8, 4  ;;  %v522_v27 = vld [vmem:[%s851_s4] ss:$0 sm:$0xff] (!%p192_p9)  ;;  %s624_s26 = sshll.u32 (!%p192_p9), %s684_s25, 4  ;;  %s625_s26 = int_to_ptr.vmem [resolvable:$false] %s624_s26 }
  0x11   : > { %563 = vmatprep.subr.bf16.mxu1 (!%p192_p9), %v617_v3  ;;  %s218_s12 = scalar_lea.vmem (!%p192_p9), [#allocation2], %s514_s9  ;;  %s626_s30 = scalar_lea.vmem (!%p192_p9), %s625_s26, 512 }
  0x12   : > { %s448_s13 = sshll.u32 (!%p192_p9), %s218_s12, 4  ;;  %s796_s13 = int_to_ptr.vmem [resolvable:$true] %s448_s13 }
  0x13   : > { %556 = vmatpush3.bf16.msra.mxu0 (!%p192_p9), %v615_v1  ;;  %s620_s23 = scalar_lea.vmem (!%p192_p9), %s796_s13, 256  ;;  %p627_p0 = scmp.lt.s32.totalorder (!%p192_p9), %s796_s13, %s625_s26 }
  0x14   : > { %564 = vmatpush3.bf16.msra.mxu1 (!%p192_p9), %v617_v3  ;;  %p621_p11 = scmp.ne.s32.totalorder (!%p192_p9), %s796_s13, %s620_s23  ;;  %p628_p1 = scmp.lt.s32.totalorder (!%p192_p9), %s626_s30, %s620_s23 }
  0x15   : > { %s860_s7 = smov (!%p220_p10, %s515_s7), 15  ;;  %565 = vmatprep.subr.bf16.mxu1 %v618_v10 }
  0x16   : > { %s516_s14 = sshll.u32 %s860_s7, 3  ;;  %p622_p12 = pnand %p621_p11, %p755_p5 }
  0x17   : > { %s223_s17 = scalar_lea.vmem %s847_s0, %s516_s14  ;;  %s542_s14 = sshll.u32 %s738_s22, 8 }
  0x18   : > { %v227_v4 = vld [vmem:[%s223_s17] sm:$0xff]  ;;  %v228_v5 = vld [vmem:[%s223_s17 + $0x8] sm:$0xff]  ;;  %v229_v6 = vld [vmem:[%s223_s17 + $0x10] sm:$0xff]  ;;  %566 = vmatpush3.bf16.msra.mxu1 %v618_v10  ;;  %s806_s22 = scalar_lea.sflag [#allocation3], %s216_s8  ;;  %p623_p13 = pneg %p622_p12 }
  0x19   : > { %v231_v7 = vpack.c.bf16 %v228_v5, %v227_v4  ;;  %v230_v8 = vld [vmem:[%s223_s17 + $0x18] sm:$0xff]  ;;  %567 = vmatprep.subr.bf16.mxu1 %v619_v11  ;;  %s801_s17 = scalar_lea.hbm %s852_s5, %s542_s14  ;;  %p629_p2 = por %p628_p1, %p627_p0 }
  0x1a   : > { %v232_v9 = vpack.c.bf16 %v230_v8, %v229_v6 }
  0x1b   : > { %557 = vmatprep.mubr.msk.bf16.mxu0 %vm256_vm0, %v231_v7  ;;  %p630_p3 = pnand %p629_p2, %p623_p13 }
  0x1c   : > { %558 = vmatmul.mubr.msk.bf16.vlgmr.msra.gmra.mrb[0].mxu0 %vm256_vm0, %v232_v9  ;;  %568 = vmatpush3.bf16.msra.mxu1 %v619_v11 }
  0xef   : > { %v559_v13 = vpop.f32.mrb[0].mxu0 }
  0xf0   : > { %v306_v14 = vadd.f32 %v559_v13, %v517_v12  ;;  %v297_v15 = vpop.f32.mrb[1].mxu0 }
  0xf1   : > { %v298_v16 = vadd.f32 %v517_v12, %v297_v15  ;;  %v560_v17 = vpop.f32.mrb[2].mxu0 }
  0xf2   : > { %v309_v18 = vadd.f32 %v560_v17, %v517_v12  ;;  %v300_v19 = vpop.f32.mrb[3].mxu0  ;;  %v314_v21 = vmax.f32 %v306_v14, 0.0 }
  0xf3   : > { %v301_v20 = vadd.f32 %v517_v12, %v300_v19  ;;  %v312_v23 = vmax.f32 %v298_v16, 0.0 }
  0xf4   : > { %v315_v22 = vmax.f32 %v309_v18, 0.0 }
  0xf5   : > { %v313_v24 = vmax.f32 %v301_v20, 0.0 }
  0xf6   : > { %v317_v25 = vpack.c.bf16 %v315_v22, %v314_v21 }
  0xf7   : > { %v316_v26 = vpack.c.bf16 %v313_v24, %v312_v23 }
  0xf9   : > { %569 = vmatprep.mubr.msk.bf16.mxu1 %vm357_vm1, %v316_v26 }
  0xfa   : > { %570 = vmatmul.mubr.msk.bf16.vlgmr.msra.gmra.mrb[0].mxu1 %vm357_vm1, %v317_v25 }
 0x1cd   : > { %v571_v28 = vpop.f32.mrb[0].mxu1 }
 0x1ce   : > { %v407_v29 = vadd.f32 %v571_v28, %v522_v27  ;;  %v398_v30 = vpop.f32.mrb[1].mxu1 }
 0x1cf   : > { %v399_v31 = vadd.f32 %v522_v27, %v398_v30  ;;  %v572_v32 = vpop.f32.mrb[2].mxu1 }
 0x1d0   : > { %v540_v33 = vpack.c.bf16 %v407_v29, %v407_v29  ;;  %v410_v34 = vadd.f32 %v572_v32, %v522_v27  ;;  %v401_v35 = vpop.f32.mrb[3].mxu1 }
 0x1d1   : > { %v538_v36 = vpack.c.bf16 %v399_v31, %v399_v31  ;;  %v402_v37 = vadd.f32 %v522_v27, %v401_v35 }
 0x1d2   : > { %432 = vst.msk [vmem:[%s218_s12 + $0x8] sm:$0xf] %vm429_vm2, %v540_v33  ;;  %v541_v38 = vpack.c.bf16 %v410_v34, %v410_v34 }
 0x1d3   : > { %430 = vst.msk [vmem:[%s218_s12] sm:$0xf] %vm429_vm2, %v538_v36  ;;  %v539_v39 = vpack.c.bf16 %v402_v37, %v402_v37 }
 0x1d4   : > { %433 = vst.msk [vmem:[%s218_s12 + $0xc] sm:$0xf] %vm429_vm2, %v541_v38 }
 0x1d5   : > { %431 = vst.msk [vmem:[%s218_s12 + $0x4] sm:$0xf] %vm429_vm2, %v539_v39 }
 0x1d6   : > { %633 = shalt.err (!%p630_p3)
}
 0x1d7   : > { %s634_s6 = scalar_lea.hbm %s801_s17, 256  ;;  %s638_s9 = scalar_lea.hbm %s852_s5, 1024 }
 0x1d8   : > { %p635_p4 = scmp.ne.s32.totalorder %s801_s17, %s634_s6  ;;  %p639_p9 = scmp.lt.u32.totalorder %s801_s17, %s852_s5 }
 0x1d9   : > { %p640_p10 = scmp.lt.u32.totalorder %s638_s9, %s634_s6  ;;  %p642_p12 = scmp.lt.u32.totalorder %s634_s6, %s801_s17 }
 0x1da   : > { %p636_p7 = pnand %p635_p4, %p755_p5 }
 0x1db   : > { %p641_p11 = por %p640_p10, %p639_p9 }
 0x1dc   : > { %p637_p8 = pneg %p636_p7 }
 0x1dd   : > { %p643_p13 = por %p642_p12, %p641_p11 }
 0x1df   : > { %p644_p0 = pnand %p643_p13, %p637_p8 }
 0x1e1   : > { %647 = shalt.err (!%p644_p0)
}
 0x1e2   : > { %s685_s12 = smov 64   ;;  %s686_s14 = smov 4  }
 0x1e3   : > { %573 = dma.vmem_to_hbm [thread:$0]  (%p755_p5), %s796_s13, 256, %s801_s17, %s806_s22, %s685_s12, %s685_s12, %s686_s14  }
 0x1e4 PF: > { %p579_p1 = scmp.ge.s32.totalorder %s682_s21, 2  ;;  %s463_s15 = sand.u32 1, %s670_s18  }
 0x1e5   : > { %s464_s16 = scalar_lea.sflag [#allocation3], %s463_s15 }
 0x1e6   : > { %p576_p2 = pnand %p579_p1, %p759_p6 }
 0x1e8   : > { %665 = dma.done.wait (!%p576_p2), %s464_s16, 256  }
 0x1e9   : > { %667 = vsyncadd (!%p576_p2), %s464_s16, 4294967040  ;;  %p15_p3 = scmp.ge.s32.totalorder %s742_s24, 6   ;;  %s855_s18 = smov %s674_s19 }
 0x1ea   : > { %s856_s19 = smov %s678_s20  ;;  %s857_s20 = smov %s753_s27 }
 0x1eb   : > { %s858_s21 = smov %s742_s24  ;;  %17 = sbr.rel (!%p15_p3) target bundleno = 3 (0x3), region = 75 }
 0x1f2   :  { %469 = vsyncpa [#allocation3], 1 }
 0x1f3   :  { %471 = vsyncpa [#allocation3 + $0x1], 1 }

</bundles_post_ra>
